<compile_context>
chip_gen: v6e
topology: v6e:2x2x1
jax: 0.10.0
libtpu: 0.0.40
codegen_flags: <defaults>
</compile_context>

<pallas_src>
import jax
import jax.numpy as jnp
from jax.experimental import pallas as pl
from jax.experimental.pallas import tpu as pltpu


def _elu(x):
    # F.elu, alpha=1.0 (f32)
    return jnp.where(x > 0, x, jnp.exp(x) - 1.0)


# ---------------------------------------------------------------------------
# Kernel 1 (gridless, tiny): hs1 = X @ W1 ; alpha = hs1 @ [att_src ; att_dst]^T
# ---------------------------------------------------------------------------
def prep_kernel(x_ref, w1_ref, att_ref, hs1_ref, alpha_ref):
    hs1 = jnp.dot(x_ref[...], w1_ref[...], preferred_element_type=jnp.float32)   # (N, H) f32
    hs1_ref[...] = hs1.astype(jnp.bfloat16)                                      # bf16 MXU operand later
    # single MXU matmul -> (N, 2): column 0 = alpha_src, column 1 = alpha_dst
    alpha_ref[...] = jnp.dot(hs1, att_ref[...], preferred_element_type=jnp.float32)


# ---------------------------------------------------------------------------
# Kernel 2 (grid over dst-row tiles): GAT attention (computed once) + conv1 + conv2
#   outputs: h2 tile, un-normalized attention tile p (bf16), 1/denominator per row
# ---------------------------------------------------------------------------
def layer1_kernel(a_dst_ref, a_src_ref, mask_ref, hs1_ref, w2_ref,
                  h2_ref, p_ref, inv_ref):
    mult = mask_ref[...].astype(jnp.float32)          # (TILE, N) edge multiplicity (0 => no edge)
    adj = mult > 0.0                                  # boolean mask, computed once
    # e[i, j] = leaky_relu(alpha_dst[i] + alpha_src[j], 0.2)
    e = a_dst_ref[...] + a_src_ref[...]               # (TILE,1) + (1,N) -> (TILE, N)
    e = jnp.where(e > 0, e, 0.2 * e)
    e = jnp.where(adj, e, jnp.float32(-1e30))
    m = jnp.max(e, axis=-1, keepdims=True)            # (TILE, 1)
    p = mult * jnp.exp(e - m)                         # f32; multiplicity matches PyG duplicate edges
    den = jnp.sum(p, axis=-1, keepdims=True)
    inv = pl.reciprocal(jnp.where(den == 0.0, 1.0, den), approx=True)   # isolated node -> zero row

    p_bf = p.astype(jnp.bfloat16)
    # aggregate first, normalize after the matmul (row scale, not an (N,N) divide)
    agg = jnp.dot(p_bf, hs1_ref[...], preferred_element_type=jnp.float32)        # (TILE, H)
    h1 = _elu(agg * inv)
    h2_ref[...] = jnp.dot(h1, w2_ref[...], preferred_element_type=jnp.float32)   # conv2 (linear)
    p_ref[...] = p_bf                                  # reused by conv3 (tied attention)
    inv_ref[...] = inv


# ---------------------------------------------------------------------------
# Kernel 3 (grid over dst-row tiles): conv3 (tied attention, reused p) + conv4 + head
#   h3 = elu( (attn @ h2) @ W2^T )  ==  elu( attn @ (h2 @ W2^T) )   (reassociated)
# ---------------------------------------------------------------------------
def layer2_kernel(p_ref, inv_ref, h2_ref, w2t_ref, w1t_ref, wp_ref, bp_ref,
                  h4_ref, logp_ref):
    agg = jnp.dot(p_ref[...], h2_ref[...], preferred_element_type=jnp.float32) * inv_ref[...]
    h3 = _elu(jnp.dot(agg, w2t_ref[...], preferred_element_type=jnp.float32))    # (TILE, H)
    h4 = jnp.dot(h3, w1t_ref[...], preferred_element_type=jnp.float32)           # (TILE, in_dim)
    h4_ref[...] = h4
    pred = jnp.dot(h4, wp_ref[...], preferred_element_type=jnp.float32) + bp_ref[...]
    z = pred - jnp.max(pred, axis=-1, keepdims=True)
    logp_ref[...] = z - jnp.log(jnp.sum(jnp.exp(z), axis=-1, keepdims=True))


# ---------------------------------------------------------------------------
# Wrapper
# ---------------------------------------------------------------------------
def gaae_mod2_forward(features, edge_index, params, *, tile=256):
    N, in_dim = features.shape
    H = params["w1"].shape[1]
    out_dim = params["w2"].shape[1]
    P = params["wp"].shape[1]

    TILE = min(tile, N)
    assert N % TILE == 0, "N must be a multiple of the dst-row tile"
    # TODO(synk): pad N to a multiple of TILE (with zero mask rows) for arbitrary graph sizes;
    #             for very large sparse graphs, replace the dense mask by CSR + in-kernel tiles.
    T = N // TILE

    # Glue: densify edge_index (2, E) -> bf16 multiplicity mask (dst, src).
    mask = (jnp.zeros((N, N), jnp.float32)
            .at[edge_index[1], edge_index[0]].add(1.0)
            .astype(jnp.bfloat16))

    # Parameter prep (done once in the wrapper: casts / transposes are layout plumbing).
    x_bf = features.astype(jnp.bfloat16)
    w1_bf = params["w1"].astype(jnp.bfloat16)
    att_pair = jnp.concatenate([params["att_src1"], params["att_dst1"]], axis=0).T  # (H, 2) f32
    w2 = params["w2"].astype(jnp.float32)
    w2t = params["w2"].T.astype(jnp.float32)
    w1t = params["w1"].T.astype(jnp.float32)
    wp = params["wp"].astype(jnp.float32)
    bp = params["bp"].astype(jnp.float32)

    vmem = pl.BlockSpec(memory_space=pltpu.MemorySpace.VMEM)
    cparams = pltpu.CompilerParams(dimension_semantics=("parallel",),
                                   vmem_limit_bytes=32 * 1024 * 1024)

    # --- kernel 1: transformed source features + attention logits (tiny, gridless) ---
    hs1_bf, alpha = pl.pallas_call(
        prep_kernel,
        out_shape=(jax.ShapeDtypeStruct((N, H), jnp.bfloat16),
                   jax.ShapeDtypeStruct((N, 2), jnp.float32)),
        in_specs=[vmem, vmem, vmem],
        out_specs=(vmem, vmem),
    )(x_bf, w1_bf, att_pair)

    a_src_row = alpha[:, 0].reshape(1, N)   # source term broadcast along lanes
    a_dst = alpha[:, 1:2]                   # (N, 1), tiled per dst-row block

    # --- kernel 2: attention (once) + conv1 + conv2, tiled over dst rows ---
    h2, p_bf, invden = pl.pallas_call(
        layer1_kernel,
        out_shape=(jax.ShapeDtypeStruct((N, out_dim), jnp.float32),
                   jax.ShapeDtypeStruct((N, N), jnp.bfloat16),
                   jax.ShapeDtypeStruct((N, 1), jnp.float32)),
        grid=(T,),
        in_specs=[
            pl.BlockSpec((TILE, 1), lambda t: (t, 0)),        # alpha_dst tile
            pl.BlockSpec((1, N), lambda t: (0, 0)),           # alpha_src row (resident)
            pl.BlockSpec((TILE, N), lambda t: (t, 0)),        # bf16 mask tile (streamed)
            pl.BlockSpec((N, H), lambda t: (0, 0)),           # hs1 bf16 (resident)
            pl.BlockSpec((H, out_dim), lambda t: (0, 0)),     # W2
        ],
        out_specs=(
            pl.BlockSpec((TILE, out_dim), lambda t: (t, 0)),
            pl.BlockSpec((TILE, N), lambda t: (t, 0)),
            pl.BlockSpec((TILE, 1), lambda t: (t, 0)),
        ),
        compiler_params=cparams,
    )(a_dst, a_src_row, mask, hs1_bf, w2)

    h2_bf = h2.astype(jnp.bfloat16)   # MXU operand for the second (tied-attention) aggregation

    # --- kernel 3: conv3 (reuses p, invden) + conv4 + prediction head, tiled over dst rows ---
    h4, logp = pl.pallas_call(
        layer2_kernel,
        out_shape=(jax.ShapeDtypeStruct((N, in_dim), jnp.float32),
                   jax.ShapeDtypeStruct((N, P), jnp.float32)),
        grid=(T,),
        in_specs=[
            pl.BlockSpec((TILE, N), lambda t: (t, 0)),        # p tile (bf16, streamed)
            pl.BlockSpec((TILE, 1), lambda t: (t, 0)),        # 1/denominator tile
            pl.BlockSpec((N, out_dim), lambda t: (0, 0)),     # h2 (resident, bf16)
            pl.BlockSpec((out_dim, H), lambda t: (0, 0)),     # W2^T
            pl.BlockSpec((H, in_dim), lambda t: (0, 0)),      # W1^T
            pl.BlockSpec((in_dim, P), lambda t: (0, 0)),      # Wp
            pl.BlockSpec((1, P), lambda t: (0, 0)),           # bp
        ],
        out_specs=(
            pl.BlockSpec((TILE, in_dim), lambda t: (t, 0)),
            pl.BlockSpec((TILE, P), lambda t: (t, 0)),
        ),
        compiler_params=cparams,
    )(p_bf, invden, h2_bf, w2t, w1t, wp, bp)

    return h2, h4, logp


if __name__ == "__main__":
    key = jax.random.PRNGKey(0)
    # hidden_dims = [in_dim, num_hidden, out_dim], mlp_dims = pred_out
    N, in_dim, num_hidden, out_dim, pred_out = 256, 64, 32, 16, 8
    k = jax.random.split(key, 8)

    features = jax.random.normal(k[0], (N, in_dim), jnp.float32)

    # Deterministic graph: self loops + bidirectional ring (every node has in-edges).
    ar = jnp.arange(N, dtype=jnp.int32)
    src = jnp.concatenate([ar, ar, ar])
    dst = jnp.concatenate([ar, (ar + 1) % N, (ar - 1) % N])
    edge_index = jnp.stack([src, dst]).astype(jnp.int32)   # (2, 3N)

    def xavier(kk, shape):
        std = 1.414 * (2.0 / (shape[0] + shape[1])) ** 0.5
        return std * jax.random.normal(kk, shape, jnp.float32)

    # conv2/conv3/conv4 attention params and conv3/conv4 weights are unused/tied,
    # so only W1, W2, conv1's att vectors, and the prediction head are materialized.
    params = dict(
        w1=xavier(k[1], (in_dim, num_hidden)),        # conv1.lin_src (= lin_dst)
        w2=xavier(k[2], (num_hidden, out_dim)),       # conv2.lin_src (= lin_dst)
        att_src1=xavier(k[3], (1, num_hidden)),       # conv1.att_src (heads=1)
        att_dst1=xavier(k[4], (1, num_hidden)),       # conv1.att_dst
        wp=xavier(k[5], (in_dim, pred_out)),          # linear_pred.weight (in->out)
        bp=jnp.zeros((1, pred_out), jnp.float32),     # linear_pred.bias
    )

    h2, h4, logp = gaae_mod2_forward(features, edge_index, params, tile=128)
    jax.block_until_ready((h2, h4, logp))
    assert h2.shape == (N, out_dim) and h4.shape == (N, in_dim) and logp.shape == (N, pred_out)
    assert bool(jnp.isfinite(h2).all() & jnp.isfinite(h4).all() & jnp.isfinite(logp).all())
    print("KERNEL_OK")
</pallas_src>

<mosaic_0001>
module attributes {stable_mosaic.version = 11 : i64} {
  func.func @prep_kernel(%arg0: memref<256x64xbf16, #tpu.memory_space<vmem>>, %arg1: memref<64x32xbf16, #tpu.memory_space<vmem>>, %arg2: memref<32x2xf32, #tpu.memory_space<vmem>>, %arg3: memref<256x32xbf16, #tpu.memory_space<vmem>>, %arg4: memref<256x2xf32, #tpu.memory_space<vmem>>) attributes {dimension_semantics = [], scalar_prefetch = 0 : i64, scratch_operands = 0 : i64, tpu.core_type = #tpu.core_type<tc>} {
    %c0 = arith.constant 0 : index
    %c0_0 = arith.constant 0 : index
    %0 = vector.load %arg0[%c0, %c0_0] : memref<256x64xbf16, #tpu.memory_space<vmem>>, vector<256x64xbf16>
    %c0_1 = arith.constant 0 : index
    %c0_2 = arith.constant 0 : index
    %1 = vector.load %arg1[%c0_1, %c0_2] : memref<64x32xbf16, #tpu.memory_space<vmem>>, vector<64x32xbf16>
    %cst = arith.constant dense<0.000000e+00> : vector<256x32xf32>
    %2 = tpu.matmul %0, %1, %cst {dimension_numbers = #tpu.dot_dimension_numbers<[1], [0], [0], [1], [0, 0, 1, 1], [], []>} : vector<256x64xbf16>, vector<64x32xbf16>, vector<256x32xf32> -> vector<256x32xf32>
    %3 = arith.truncf %2 : vector<256x32xf32> to vector<256x32xbf16>
    %c0_3 = arith.constant 0 : index
    %c0_4 = arith.constant 0 : index
    %4 = vector.load %arg3[%c0_3, %c0_4] : memref<256x32xbf16, #tpu.memory_space<vmem>>, vector<256x32xbf16>
    tpu.vector_store %arg3[%c0_3, %c0_4], %3 {strides = array<i32>} : memref<256x32xbf16, #tpu.memory_space<vmem>>, vector<256x32xbf16>,
    %c0_5 = arith.constant 0 : index
    %c0_6 = arith.constant 0 : index
    %5 = vector.load %arg2[%c0_5, %c0_6] : memref<32x2xf32, #tpu.memory_space<vmem>>, vector<32x2xf32>
    %cst_7 = arith.constant dense<0.000000e+00> : vector<256x2xf32>
    %6 = tpu.matmul %2, %5, %cst_7 {dimension_numbers = #tpu.dot_dimension_numbers<[1], [0], [0], [1], [0, 0, 1, 1], [], []>} : vector<256x32xf32>, vector<32x2xf32>, vector<256x2xf32> -> vector<256x2xf32>
    %c0_8 = arith.constant 0 : index
    %c0_9 = arith.constant 0 : index
    %7 = vector.load %arg4[%c0_8, %c0_9] : memref<256x2xf32, #tpu.memory_space<vmem>>, vector<256x2xf32>
    tpu.vector_store %arg4[%c0_8, %c0_9], %6 {strides = array<i32>} : memref<256x2xf32, #tpu.memory_space<vmem>>, vector<256x2xf32>,
    return
  }
}

</mosaic_0001>

<bundles_post_ra>
// kernel: tpu_custom_call.1
= control target key start
LH: loop header
LB: loop body
LE: loop exit
PB: predicated region body
PF: predicated region fallthrough
CT: control target
= control target key end

     0   :  { %vm161_vm0 = vcmask 523264   ;;  %vm499_vm1 = vcmask 257024   ;;  %vm536_vm2 = vcmask 261120   ;;  %vm858_vm3 = vcmask 15360   ;;  %s1604_s1 = inlined_call_operand.vmem [shape: bf16[64,32], index: 1, kind: input, shape index: {}]   ;;  %s1605_s0 = inlined_call_operand.vmem [shape: bf16[256,64], index: 0, kind: input, shape index: {}]   ;;  %s1606_s2 = inlined_call_operand.vmem [shape: f32[32,2], index: 2, kind: input, shape index: {}]   ;;  %s1607_s3 = inlined_call_operand.vmem [shape: bf16[256,32], index: 3, kind: output, shape index: {0}]   ;;  %s1608_s4 = inlined_call_operand.vmem [shape: f32[256,2], index: 4, kind: output, shape index: {1}]  }
   0x1   :  { %v1183_v0 = vld [vmem:[%s1604_s1 + $0x18] sm:$0xff]   ;;  %v1184_v1 = vld [vmem:[%s1604_s1 + $0x10] sm:$0xff]   ;;  %v1185_v2 = vld [vmem:[%s1604_s1 + $0x8] sm:$0xff]  }
   0x2   :  { %1087 = vmatprep.subr.bf16.mxu0 %v1183_v0  ;;  %v1187_v3 = vld [vmem:[%s1605_s0] sm:$0xff]   ;;  %v1188_v5 = vld [vmem:[%s1605_s0 + $0x8] sm:$0xff]   ;;  %v1189_v6 = vld [vmem:[%s1605_s0 + $0x10] sm:$0xff]  }
   0x3   :  { %1088 = vmatpush3.bf16.msra.mxu0 %v1183_v0  ;;  %1095 = vmatprep.mubr.msk.bf16.mxu0 %vm161_vm0, %v1187_v3  ;;  %v1186_v4 = vld [vmem:[%s1604_s1] sm:$0xff]   ;;  %v535_v7 = vld [vmem:[%s1606_s2 + $0x18] sm:$0xff]  ;;  %v1192_v10 = vld [vmem:[%s1605_s0 + $0x28] sm:$0xff]  }
   0x4   :  { %1089 = vmatprep.subr.bf16.mxu0 %v1184_v1  ;;  %1127 = vmatprep.subr.mxu1 %v535_v7  ;;  %v1190_v8 = vld [vmem:[%s1605_s0 + $0x18] sm:$0xff]   ;;  %v1191_v9 = vld [vmem:[%s1605_s0 + $0x20] sm:$0xff]   ;;  %v1193_v11 = vld [vmem:[%s1605_s0 + $0x30] sm:$0xff]  }
   0x5   :  { %1128 = vmatpush3.msra.mxu1 %v535_v7  ;;  %v1194_v12 = vld [vmem:[%s1605_s0 + $0x38] sm:$0xff]   ;;  %v1195_v13 = vld [vmem:[%s1605_s0 + $0x40] sm:$0xff]   ;;  %v1196_v14 = vld [vmem:[%s1605_s0 + $0x48] sm:$0xff]  }
   0x6   :  { %v1197_v15 = vld [vmem:[%s1605_s0 + $0x50] sm:$0xff]   ;;  %v1198_v16 = vld [vmem:[%s1605_s0 + $0x58] sm:$0xff]   ;;  %v1199_v17 = vld [vmem:[%s1605_s0 + $0x60] sm:$0xff]  }
   0x7   :  { %1090 = vmatpush3.bf16.msra.mxu0 %v1184_v1  ;;  %v1200_v18 = vld [vmem:[%s1605_s0 + $0x68] sm:$0xff]   ;;  %v1201_v19 = vld [vmem:[%s1605_s0 + $0x70] sm:$0xff]   ;;  %v1202_v20 = vld [vmem:[%s1605_s0 + $0x78] sm:$0xff]  }
   0x8   :  { %1091 = vmatprep.subr.bf16.mxu0 %v1185_v2  ;;  %v534_v21 = vld [vmem:[%s1606_s2 + $0x10] sm:$0xff]  ;;  %v533_v22 = vld [vmem:[%s1606_s2 + $0x8] sm:$0xff]  ;;  %v532_v23 = vld [vmem:[%s1606_s2] sm:$0xff] }
   0x9   :  { %1129 = vmatprep.subr.mxu1 %v534_v21 }
   0xa   :  { %1130 = vmatpush3.msra.mxu1 %v534_v21 }
   0xb   :  { %1092 = vmatpush3.bf16.msra.mxu0 %v1185_v2  ;;  %1131 = vmatprep.subr.mxu1 %v533_v22 }
   0xc   :  { %1093 = vmatprep.subr.bf16.mxu0 %v1186_v4  ;;  %1132 = vmatpush3.msra.mxu1 %v533_v22 }
   0xd   :  { %1133 = vmatprep.subr.mxu1 %v532_v23 }
   0xe   :  { %1134 = vmatpush3.msra.mxu1 %v532_v23 }
   0xf   :  { %1094 = vmatpush3.bf16.msra.mxu0 %v1186_v4 }
  0x12   :  { %1096 = vmatmul.mubr.msk.bf16.vlgmr.msra.gmra.mxu0 %vm161_vm0, %v1188_v5 }
  0x13   :  { %1099 = vmatprep.mubr.msk.bf16.mxu0 %vm161_vm0, %v1189_v6 }
  0x1a   :  { %1100 = vmatmul.mubr.msk.bf16.gmra.mxu0 %vm161_vm0, %v1190_v8 }
  0x1b   :  { %1103 = vmatprep.mubr.msk.bf16.mxu0 %vm161_vm0, %v1191_v9 }
  0x22   :  { %1104 = vmatmul.mubr.msk.bf16.gmra.mxu0 %vm161_vm0, %v1192_v10 }
  0x23   :  { %1107 = vmatprep.mubr.msk.bf16.mxu0 %vm161_vm0, %v1193_v11 }
  0x2a   :  { %1108 = vmatmul.mubr.msk.bf16.gmra.mxu0 %vm161_vm0, %v1194_v12 }
  0x2b   :  { %1111 = vmatprep.mubr.msk.bf16.mxu0 %vm161_vm0, %v1195_v13 }
  0x32   :  { %1112 = vmatmul.mubr.msk.bf16.gmra.mxu0 %vm161_vm0, %v1196_v14 }
  0x33   :  { %1115 = vmatprep.mubr.msk.bf16.mxu0 %vm161_vm0, %v1197_v15 }
  0x3a   :  { %1116 = vmatmul.mubr.msk.bf16.gmra.mxu0 %vm161_vm0, %v1198_v16 }
  0x3b   :  { %1119 = vmatprep.mubr.msk.bf16.mxu0 %vm161_vm0, %v1199_v17 }
  0x42   :  { %1120 = vmatmul.mubr.msk.bf16.gmra.mxu0 %vm161_vm0, %v1200_v18 }
  0x43   :  { %1123 = vmatprep.mubr.msk.bf16.mxu0 %vm161_vm0, %v1201_v19 }
  0x4a   :  { %1124 = vmatmul.mubr.msk.bf16.gmra.mxu0 %vm161_vm0, %v1202_v20 }
  0xd2   :  { %v1097_v24 = vpop.f32.mrf.mxu0 }
  0xd3   :  { %v1001_v25 = vpack.c.bf16 %v1097_v24, %v1097_v24 }
  0xd4   :  { %v244_v26 = vpop.f32.mrf.mxu0 }
  0xd5   :  { %502 = vst.msk [vmem:[%s1607_s3 + $0x8] sm:$0xf] %vm499_vm1, %v1001_v25  ;;  %v999_v27 = vpack.c.bf16 %v244_v26, %v244_v26  ;;  %1135 = vmatprep.mubr.msk.f32.mxu1 %vm536_vm2, %v244_v26 }
  0xd6   :  { %v1098_v28 = vpop.f32.mrf.mxu0 }
  0xd7   :  { %500 = vst.msk [vmem:[%s1607_s3] sm:$0xf] %vm499_vm1, %v999_v27  ;;  %v1002_v29 = vpack.c.bf16 %v1098_v28, %v1098_v28 }
  0xd8   :  { %v247_v30 = vpop.f32.mrf.mxu0 }
  0xd9   :  { %503 = vst.msk [vmem:[%s1607_s3 + $0xc] sm:$0xf] %vm499_vm1, %v1002_v29  ;;  %v1000_v31 = vpack.c.bf16 %v247_v30, %v247_v30  ;;  %1136 = vmatmul.mubr.msk.f32.vlgmr.msra.gmra.mxu1 %vm536_vm2, %v247_v30 }
  0xda   :  { %v1101_v32 = vpop.f32.mrf.mxu0  ;;  %1138 = vmatprep.mubr.msk.f32.mxu1 %vm536_vm2, %v1097_v24 }
  0xdb   :  { %501 = vst.msk [vmem:[%s1607_s3 + $0x4] sm:$0xf] %vm499_vm1, %v1000_v31  ;;  %v1005_v33 = vpack.c.bf16 %v1101_v32, %v1101_v32 }
  0xdc   :  { %v260_v34 = vpop.f32.mrf.mxu0 }
  0xdd   :  { %506 = vst.msk [vmem:[%s1607_s3 + $0x18] sm:$0xf] %vm499_vm1, %v1005_v33  ;;  %v1003_v35 = vpack.c.bf16 %v260_v34, %v260_v34  ;;  %1139 = vmatmul.mubr.msk.f32.gmra.mxu1 %vm536_vm2, %v1098_v28 }
  0xde   :  { %v1102_v36 = vpop.f32.mrf.mxu0  ;;  %1141 = vmatprep.mubr.msk.f32.mxu1 %vm536_vm2, %v260_v34 }
  0xdf   :  { %504 = vst.msk [vmem:[%s1607_s3 + $0x10] sm:$0xf] %vm499_vm1, %v1003_v35  ;;  %v1006_v37 = vpack.c.bf16 %v1102_v36, %v1102_v36 }
  0xe0   :  { %v263_v38 = vpop.f32.mrf.mxu0 }
  0xe1   :  { %507 = vst.msk [vmem:[%s1607_s3 + $0x1c] sm:$0xf] %vm499_vm1, %v1006_v37  ;;  %v1004_v39 = vpack.c.bf16 %v263_v38, %v263_v38  ;;  %1142 = vmatmul.mubr.msk.f32.gmra.mxu1 %vm536_vm2, %v263_v38 }
  0xe2   :  { %v1105_v40 = vpop.f32.mrf.mxu0  ;;  %1144 = vmatprep.mubr.msk.f32.mxu1 %vm536_vm2, %v1101_v32 }
  0xe3   :  { %505 = vst.msk [vmem:[%s1607_s3 + $0x14] sm:$0xf] %vm499_vm1, %v1004_v39  ;;  %v1009_v41 = vpack.c.bf16 %v1105_v40, %v1105_v40 }
  0xe4   :  { %v276_v42 = vpop.f32.mrf.mxu0 }
  0xe5   :  { %510 = vst.msk [vmem:[%s1607_s3 + $0x28] sm:$0xf] %vm499_vm1, %v1009_v41  ;;  %v1007_v43 = vpack.c.bf16 %v276_v42, %v276_v42  ;;  %1145 = vmatmul.mubr.msk.f32.gmra.mxu1 %vm536_vm2, %v1102_v36 }
  0xe6   :  { %v1106_v44 = vpop.f32.mrf.mxu0  ;;  %1147 = vmatprep.mubr.msk.f32.mxu1 %vm536_vm2, %v276_v42 }
  0xe7   :  { %508 = vst.msk [vmem:[%s1607_s3 + $0x20] sm:$0xf] %vm499_vm1, %v1007_v43  ;;  %v1010_v45 = vpack.c.bf16 %v1106_v44, %v1106_v44 }
  0xe8   :  { %v279_v46 = vpop.f32.mrf.mxu0 }
  0xe9   :  { %511 = vst.msk [vmem:[%s1607_s3 + $0x2c] sm:$0xf] %vm499_vm1, %v1010_v45  ;;  %v1008_v47 = vpack.c.bf16 %v279_v46, %v279_v46  ;;  %1148 = vmatmul.mubr.msk.f32.gmra.mxu1 %vm536_vm2, %v279_v46 }
  0xea   :  { %v1109_v48 = vpop.f32.mrf.mxu0  ;;  %1150 = vmatprep.mubr.msk.f32.mxu1 %vm536_vm2, %v1105_v40 }
  0xeb   :  { %509 = vst.msk [vmem:[%s1607_s3 + $0x24] sm:$0xf] %vm499_vm1, %v1008_v47  ;;  %v1013_v49 = vpack.c.bf16 %v1109_v48, %v1109_v48 }
  0xec   :  { %v292_v50 = vpop.f32.mrf.mxu0 }
  0xed   :  { %514 = vst.msk [vmem:[%s1607_s3 + $0x38] sm:$0xf] %vm499_vm1, %v1013_v49  ;;  %v1011_v51 = vpack.c.bf16 %v292_v50, %v292_v50  ;;  %1151 = vmatmul.mubr.msk.f32.gmra.mxu1 %vm536_vm2, %v1106_v44 }
  0xee   :  { %v1110_v52 = vpop.f32.mrf.mxu0  ;;  %1153 = vmatprep.mubr.msk.f32.mxu1 %vm536_vm2, %v292_v50 }
  0xef   :  { %512 = vst.msk [vmem:[%s1607_s3 + $0x30] sm:$0xf] %vm499_vm1, %v1011_v51  ;;  %v1014_v53 = vpack.c.bf16 %v1110_v52, %v1110_v52 }
  0xf0   :  { %v295_v54 = vpop.f32.mrf.mxu0 }
  0xf1   :  { %515 = vst.msk [vmem:[%s1607_s3 + $0x3c] sm:$0xf] %vm499_vm1, %v1014_v53  ;;  %v1012_v55 = vpack.c.bf16 %v295_v54, %v295_v54  ;;  %1154 = vmatmul.mubr.msk.f32.gmra.mxu1 %vm536_vm2, %v295_v54 }
  0xf2   :  { %v1113_v56 = vpop.f32.mrf.mxu0  ;;  %1156 = vmatprep.mubr.msk.f32.mxu1 %vm536_vm2, %v1109_v48 }
  0xf3   :  { %513 = vst.msk [vmem:[%s1607_s3 + $0x34] sm:$0xf] %vm499_vm1, %v1012_v55  ;;  %v1017_v57 = vpack.c.bf16 %v1113_v56, %v1113_v56 }
  0xf4   :  { %v308_v58 = vpop.f32.mrf.mxu0 }
  0xf5   :  { %518 = vst.msk [vmem:[%s1607_s3 + $0x48] sm:$0xf] %vm499_vm1, %v1017_v57  ;;  %v1015_v59 = vpack.c.bf16 %v308_v58, %v308_v58  ;;  %1157 = vmatmul.mubr.msk.f32.gmra.mxu1 %vm536_vm2, %v1110_v52 }
  0xf6   :  { %v1114_v60 = vpop.f32.mrf.mxu0  ;;  %1159 = vmatprep.mubr.msk.f32.mxu1 %vm536_vm2, %v308_v58 }
  0xf7   :  { %516 = vst.msk [vmem:[%s1607_s3 + $0x40] sm:$0xf] %vm499_vm1, %v1015_v59  ;;  %v1018_v61 = vpack.c.bf16 %v1114_v60, %v1114_v60 }
  0xf8   :  { %v311_v62 = vpop.f32.mrf.mxu0 }
  0xf9   :  { %519 = vst.msk [vmem:[%s1607_s3 + $0x4c] sm:$0xf] %vm499_vm1, %v1018_v61  ;;  %v1016_v63 = vpack.c.bf16 %v311_v62, %v311_v62  ;;  %1160 = vmatmul.mubr.msk.f32.gmra.mxu1 %vm536_vm2, %v311_v62 }
  0xfa   :  { %v1117_v0 = vpop.f32.mrf.mxu0  ;;  %1162 = vmatprep.mubr.msk.f32.mxu1 %vm536_vm2, %v1113_v56 }
  0xfb   :  { %517 = vst.msk [vmem:[%s1607_s3 + $0x44] sm:$0xf] %vm499_vm1, %v1016_v63  ;;  %v1021_v1 = vpack.c.bf16 %v1117_v0, %v1117_v0 }
  0xfc   :  { %v324_v2 = vpop.f32.mrf.mxu0 }
  0xfd   :  { %522 = vst.msk [vmem:[%s1607_s3 + $0x58] sm:$0xf] %vm499_vm1, %v1021_v1  ;;  %v1019_v3 = vpack.c.bf16 %v324_v2, %v324_v2  ;;  %1163 = vmatmul.mubr.msk.f32.gmra.mxu1 %vm536_vm2, %v1114_v60 }
  0xfe   :  { %v1118_v4 = vpop.f32.mrf.mxu0  ;;  %1165 = vmatprep.mubr.msk.f32.mxu1 %vm536_vm2, %v324_v2 }
  0xff   :  { %520 = vst.msk [vmem:[%s1607_s3 + $0x50] sm:$0xf] %vm499_vm1, %v1019_v3  ;;  %v1022_v5 = vpack.c.bf16 %v1118_v4, %v1118_v4 }
 0x100   :  { %v327_v6 = vpop.f32.mrf.mxu0 }
 0x101   :  { %523 = vst.msk [vmem:[%s1607_s3 + $0x5c] sm:$0xf] %vm499_vm1, %v1022_v5  ;;  %v1020_v7 = vpack.c.bf16 %v327_v6, %v327_v6  ;;  %1166 = vmatmul.mubr.msk.f32.gmra.mxu1 %vm536_vm2, %v327_v6 }
 0x102   :  { %v1121_v8 = vpop.f32.mrf.mxu0  ;;  %1168 = vmatprep.mubr.msk.f32.mxu1 %vm536_vm2, %v1117_v0 }
 0x103   :  { %521 = vst.msk [vmem:[%s1607_s3 + $0x54] sm:$0xf] %vm499_vm1, %v1020_v7  ;;  %v1025_v9 = vpack.c.bf16 %v1121_v8, %v1121_v8 }
 0x104   :  { %v340_v10 = vpop.f32.mrf.mxu0 }
 0x105   :  { %526 = vst.msk [vmem:[%s1607_s3 + $0x68] sm:$0xf] %vm499_vm1, %v1025_v9  ;;  %v1023_v11 = vpack.c.bf16 %v340_v10, %v340_v10  ;;  %1169 = vmatmul.mubr.msk.f32.gmra.mxu1 %vm536_vm2, %v1118_v4 }
 0x106   :  { %v1122_v12 = vpop.f32.mrf.mxu0  ;;  %1171 = vmatprep.mubr.msk.f32.mxu1 %vm536_vm2, %v340_v10 }
 0x107   :  { %524 = vst.msk [vmem:[%s1607_s3 + $0x60] sm:$0xf] %vm499_vm1, %v1023_v11  ;;  %v1026_v13 = vpack.c.bf16 %v1122_v12, %v1122_v12 }
 0x108   :  { %v343_v14 = vpop.f32.mrf.mxu0 }
 0x109   :  { %527 = vst.msk [vmem:[%s1607_s3 + $0x6c] sm:$0xf] %vm499_vm1, %v1026_v13  ;;  %v1024_v15 = vpack.c.bf16 %v343_v14, %v343_v14  ;;  %1172 = vmatmul.mubr.msk.f32.gmra.mxu1 %vm536_vm2, %v343_v14 }
 0x10a   :  { %v1125_v16 = vpop.f32.mrf.mxu0  ;;  %1174 = vmatprep.mubr.msk.f32.mxu1 %vm536_vm2, %v1121_v8 }
 0x10b   :  { %525 = vst.msk [vmem:[%s1607_s3 + $0x64] sm:$0xf] %vm499_vm1, %v1024_v15  ;;  %v1029_v17 = vpack.c.bf16 %v1125_v16, %v1125_v16 }
 0x10c   :  { %v356_v18 = vpop.f32.mrf.mxu0 }
 0x10d   :  { %530 = vst.msk [vmem:[%s1607_s3 + $0x78] sm:$0xf] %vm499_vm1, %v1029_v17  ;;  %v1027_v19 = vpack.c.bf16 %v356_v18, %v356_v18  ;;  %1175 = vmatmul.mubr.msk.f32.gmra.mxu1 %vm536_vm2, %v1122_v12 }
 0x10e   :  { %v1126_v20 = vpop.f32.mrf.mxu0  ;;  %1177 = vmatprep.mubr.msk.f32.mxu1 %vm536_vm2, %v356_v18 }
 0x10f   :  { %528 = vst.msk [vmem:[%s1607_s3 + $0x70] sm:$0xf] %vm499_vm1, %v1027_v19  ;;  %v1030_v21 = vpack.c.bf16 %v1126_v20, %v1126_v20 }
 0x110   :  { %v359_v22 = vpop.f32.mrf.mxu0 }
 0x111   :  { %531 = vst.msk [vmem:[%s1607_s3 + $0x7c] sm:$0xf] %vm499_vm1, %v1030_v21  ;;  %v1028_v23 = vpack.c.bf16 %v359_v22, %v359_v22  ;;  %1178 = vmatmul.mubr.msk.f32.gmra.mxu1 %vm536_vm2, %v359_v22 }
 0x112   :  { %1180 = vmatprep.mubr.msk.f32.mxu1 %vm536_vm2, %v1125_v16 }
 0x113   :  { %529 = vst.msk [vmem:[%s1607_s3 + $0x74] sm:$0xf] %vm499_vm1, %v1028_v23 }
 0x115   :  { %1181 = vmatmul.mubr.msk.f32.gmra.mxu1 %vm536_vm2, %v1126_v20 }
 0x199   :  { %v1137_v24 = vpop.f32.mrf.mxu1 }
 0x19a   :  { %860 = vst.msk [vmem:[%s1608_s4 + $0x8] sm:$0xff] %vm858_vm3, %v1137_v24 }
 0x19b   :  { %v699_v25 = vpop.f32.mrf.mxu1 }
 0x19c   :  { %859 = vst.msk [vmem:[%s1608_s4] sm:$0xff] %vm858_vm3, %v699_v25 }
 0x19d   :  { %v1140_v26 = vpop.f32.mrf.mxu1 }
 0x19e   :  { %862 = vst.msk [vmem:[%s1608_s4 + $0x18] sm:$0xff] %vm858_vm3, %v1140_v26 }
 0x19f   :  { %v709_v27 = vpop.f32.mrf.mxu1 }
 0x1a0   :  { %861 = vst.msk [vmem:[%s1608_s4 + $0x10] sm:$0xff] %vm858_vm3, %v709_v27 }
 0x1a1   :  { %v1143_v28 = vpop.f32.mrf.mxu1 }
 0x1a2   :  { %864 = vst.msk [vmem:[%s1608_s4 + $0x28] sm:$0xff] %vm858_vm3, %v1143_v28 }
 0x1a3   :  { %v719_v29 = vpop.f32.mrf.mxu1 }
 0x1a4   :  { %863 = vst.msk [vmem:[%s1608_s4 + $0x20] sm:$0xff] %vm858_vm3, %v719_v29 }
 0x1a5   :  { %v1146_v30 = vpop.f32.mrf.mxu1 }
 0x1a6   :  { %866 = vst.msk [vmem:[%s1608_s4 + $0x38] sm:$0xff] %vm858_vm3, %v1146_v30 }
 0x1a7   :  { %v729_v31 = vpop.f32.mrf.mxu1 }
 0x1a8   :  { %865 = vst.msk [vmem:[%s1608_s4 + $0x30] sm:$0xff] %vm858_vm3, %v729_v31 }
 0x1a9   :  { %v1149_v32 = vpop.f32.mrf.mxu1 }
 0x1aa   :  { %868 = vst.msk [vmem:[%s1608_s4 + $0x48] sm:$0xff] %vm858_vm3, %v1149_v32 }
 0x1ab   :  { %v739_v33 = vpop.f32.mrf.mxu1 }
 0x1ac   :  { %867 = vst.msk [vmem:[%s1608_s4 + $0x40] sm:$0xff] %vm858_vm3, %v739_v33 }
 0x1ad   :  { %v1152_v34 = vpop.f32.mrf.mxu1 }
 0x1ae   :  { %870 = vst.msk [vmem:[%s1608_s4 + $0x58] sm:$0xff] %vm858_vm3, %v1152_v34 }
 0x1af   :  { %v749_v35 = vpop.f32.mrf.mxu1 }
 0x1b0   :  { %869 = vst.msk [vmem:[%s1608_s4 + $0x50] sm:$0xff] %vm858_vm3, %v749_v35 }
 0x1b1   :  { %v1155_v36 = vpop.f32.mrf.mxu1 }
 0x1b2   :  { %872 = vst.msk [vmem:[%s1608_s4 + $0x68] sm:$0xff] %vm858_vm3, %v1155_v36 }
 0x1b3   :  { %v759_v37 = vpop.f32.mrf.mxu1 }
 0x1b4   :  { %871 = vst.msk [vmem:[%s1608_s4 + $0x60] sm:$0xff] %vm858_vm3, %v759_v37 }
 0x1b5   :  { %v1158_v38 = vpop.f32.mrf.mxu1 }
 0x1b6   :  { %874 = vst.msk [vmem:[%s1608_s4 + $0x78] sm:$0xff] %vm858_vm3, %v1158_v38 }
 0x1b7   :  { %v769_v39 = vpop.f32.mrf.mxu1 }
 0x1b8   :  { %873 = vst.msk [vmem:[%s1608_s4 + $0x70] sm:$0xff] %vm858_vm3, %v769_v39 }
 0x1b9   :  { %v1161_v40 = vpop.f32.mrf.mxu1 }
 0x1ba   :  { %876 = vst.msk [vmem:[%s1608_s4 + $0x88] sm:$0xff] %vm858_vm3, %v1161_v40 }
 0x1bb   :  { %v779_v41 = vpop.f32.mrf.mxu1 }
 0x1bc   :  { %875 = vst.msk [vmem:[%s1608_s4 + $0x80] sm:$0xff] %vm858_vm3, %v779_v41 }
 0x1bd   :  { %v1164_v42 = vpop.f32.mrf.mxu1 }
 0x1be   :  { %878 = vst.msk [vmem:[%s1608_s4 + $0x98] sm:$0xff] %vm858_vm3, %v1164_v42 }
 0x1bf   :  { %v789_v43 = vpop.f32.mrf.mxu1 }
 0x1c0   :  { %877 = vst.msk [vmem:[%s1608_s4 + $0x90] sm:$0xff] %vm858_vm3, %v789_v43 }
 0x1c1   :  { %v1167_v44 = vpop.f32.mrf.mxu1 }
 0x1c2   :  { %880 = vst.msk [vmem:[%s1608_s4 + $0xa8] sm:$0xff] %vm858_vm3, %v1167_v44 }
 0x1c3   :  { %v799_v45 = vpop.f32.mrf.mxu1 }
 0x1c4   :  { %879 = vst.msk [vmem:[%s1608_s4 + $0xa0] sm:$0xff] %vm858_vm3, %v799_v45 }
 0x1c5   :  { %v1170_v46 = vpop.f32.mrf.mxu1 }
 0x1c6   :  { %882 = vst.msk [vmem:[%s1608_s4 + $0xb8] sm:$0xff] %vm858_vm3, %v1170_v46 }
 0x1c7   :  { %v809_v47 = vpop.f32.mrf.mxu1 }
 0x1c8   :  { %881 = vst.msk [vmem:[%s1608_s4 + $0xb0] sm:$0xff] %vm858_vm3, %v809_v47 }
 0x1c9   :  { %v1173_v48 = vpop.f32.mrf.mxu1 }
 0x1ca   :  { %884 = vst.msk [vmem:[%s1608_s4 + $0xc8] sm:$0xff] %vm858_vm3, %v1173_v48 }
 0x1cb   :  { %v819_v49 = vpop.f32.mrf.mxu1 }
 0x1cc   :  { %883 = vst.msk [vmem:[%s1608_s4 + $0xc0] sm:$0xff] %vm858_vm3, %v819_v49 }
 0x1cd   :  { %v1176_v50 = vpop.f32.mrf.mxu1 }
 0x1ce   :  { %886 = vst.msk [vmem:[%s1608_s4 + $0xd8] sm:$0xff] %vm858_vm3, %v1176_v50 }
 0x1cf   :  { %v829_v51 = vpop.f32.mrf.mxu1 }
 0x1d0   :  { %885 = vst.msk [vmem:[%s1608_s4 + $0xd0] sm:$0xff] %vm858_vm3, %v829_v51 }
 0x1d1   :  { %v1179_v52 = vpop.f32.mrf.mxu1 }
 0x1d2   :  { %888 = vst.msk [vmem:[%s1608_s4 + $0xe8] sm:$0xff] %vm858_vm3, %v1179_v52 }
 0x1d3   :  { %v839_v53 = vpop.f32.mrf.mxu1 }
 0x1d4   :  { %887 = vst.msk [vmem:[%s1608_s4 + $0xe0] sm:$0xff] %vm858_vm3, %v839_v53 }
 0x1d5   :  { %v1182_v54 = vpop.f32.mrf.mxu1 }
 0x1d6   :  { %890 = vst.msk [vmem:[%s1608_s4 + $0xf8] sm:$0xff] %vm858_vm3, %v1182_v54 }
 0x1d7   :  { %v849_v55 = vpop.f32.mrf.mxu1 }
 0x1d8   :  { %889 = vst.msk [vmem:[%s1608_s4 + $0xf0] sm:$0xff] %vm858_vm3, %v849_v55 }

</bundles_post_ra>
